<compile_context>
chip_gen: v5e
topology: v5e:2x2
jax: 0.10.0
libtpu: 0.0.40
codegen_flags: <defaults>
</compile_context>

<pallas_src>
import functools

import jax
import jax.numpy as jnp
from jax.experimental import pallas as pl
from jax.experimental.pallas import tpu as pltpu


_LANE = 128
_MAX_TK = 2048                      # max K (weight-row) tile
_MAX_TN = 1024                      # max N (weight-col) tile -> w tile <= 8 MB f32
_VMEM_LIMIT = 48 * 1024 * 1024      # safe on v5e/v6e (128 MiB) and v7x (64 MiB)


def _round_up(n, m):
    return ((n + m - 1) // m) * m


def _dim_plan(d):
    """Return (padded_size, base_tile): base_tile divides padded_size and the
    padding waste is small (<= ~6%); thin dims use their full 128-rounded size."""
    if d <= _MAX_TK:
        p = _round_up(d, _LANE)
        return p, p
    c = _MAX_TK
    while c > _LANE:
        p = _round_up(d, c)
        if p - d <= max(256, d // 16):
            return p, c
        c //= 2
    return _round_up(d, _LANE), _LANE


def _linear_kernel(x_ref, w_ref, b_ref, o_ref, acc_ref, *, tk, apply_relu):
    """One (Mp, tn) output slab; reduction over K runs along grid axis 1."""
    k = pl.program_id(1)

    @pl.when(k == 0)
    def _init():
        acc_ref[...] = jnp.zeros_like(acc_ref)

    start = pl.multiple_of(k * tk, tk)
    x_tile = x_ref[:, pl.ds(start, tk)]
    acc_ref[...] += jnp.dot(
        x_tile.astype(w_ref.dtype), w_ref[...],
        preferred_element_type=jnp.float32,
    )

    @pl.when(k == pl.num_programs(1) - 1)
    def _finish():
        y = acc_ref[...] + b_ref[...].astype(jnp.float32)
        if apply_relu:
            y = jnp.maximum(y, 0.0)
        o_ref[...] = y.astype(o_ref.dtype)


def linear_pallas(x_padded, w_padded, b_padded, *, tk, tn, apply_relu):
    """y_padded = relu?(x_padded @ w_padded + b_padded); all operands pre-padded."""
    Mp, Kp = x_padded.shape
    Kp2, Np = w_padded.shape
    assert Kp == Kp2 and b_padded.shape == (1, Np)
    assert Kp % tk == 0 and Np % tn == 0

    grid = (Np // tn, Kp // tk)      # reduction axis last
    kernel = functools.partial(_linear_kernel, tk=tk, apply_relu=apply_relu)

    w_bytes = Kp * Np * w_padded.dtype.itemsize
    cost = pl.CostEstimate(
        flops=2 * Mp * Kp * Np,
        transcendentals=0,
        bytes_accessed=Mp * Kp * 4 + w_bytes + Np * 4 + Mp * Np * 4,
    )

    return pl.pallas_call(
        kernel,
        out_shape=jax.ShapeDtypeStruct((Mp, Np), x_padded.dtype),
        grid_spec=pltpu.PrefetchScalarGridSpec(
            num_scalar_prefetch=0,
            grid=grid,
            in_specs=[
                pl.BlockSpec((Mp, Kp), lambda j, k: (0, 0)),   # resident x slab
                pl.BlockSpec((tk, tn), lambda j, k: (k, j)),   # weight tile
                pl.BlockSpec((1, tn), lambda j, k: (0, j)),    # bias tile
            ],
            out_specs=pl.BlockSpec((Mp, tn), lambda j, k: (0, j)),
            scratch_shapes=[pltpu.VMEM((Mp, tn), jnp.float32)],
        ),
        compiler_params=pltpu.CompilerParams(
            dimension_semantics=("parallel", "arbitrary"),
            vmem_limit_bytes=_VMEM_LIMIT,
        ),
        cost_estimate=cost,
    )(x_padded, w_padded, b_padded)


def prepare_params(params, weight_dtype=jnp.float32):
    """One-time padding of weights/biases to tile-multiple shapes + tile choice.

    Use weight_dtype=jnp.bfloat16 to halve weight HBM traffic (accuracy ~1e-2).
    """
    prepared = []
    for (w, b) in params:
        K, N = w.shape
        Kp, k_base = _dim_plan(K)
        Np, n_base = _dim_plan(N)
        tk = k_base
        tn = n_base if n_base <= _MAX_TN else _MAX_TN
        if Np % tn:                  # safety fallback; not hit for these dims
            tn = n_base
        w_p = jnp.pad(w, ((0, Kp - K), (0, Np - N))).astype(weight_dtype)
        b_p = jnp.pad(b.reshape(1, -1), ((0, 0), (0, Np - N)))
        prepared.append((w_p, b_p, tk, tn))
    return prepared


def imitation_model_forward(x, prepared, out_features):
    """Forward pass; activations stay padded between layers, sliced at the end."""
    M, K = x.shape
    Mp = _round_up(M, 8)
    Kp0 = prepared[0][0].shape[0]
    h = jnp.pad(x, ((0, Mp - M), (0, Kp0 - K)))
    n_layers = len(prepared)
    for idx, (w_p, b_p, tk, tn) in enumerate(prepared):
        h = linear_pallas(h, w_p, b_p, tk=tk, tn=tn,
                          apply_relu=(idx < n_layers - 1))
    return h[:M, :out_features]


def init_params(key, in_features, out_features):
    """Deterministic init mimicking PyTorch nn.Linear defaults (U[-1/sqrt(fan_in), ...])."""
    dims = [in_features, 20000, 10000, 5000, out_features]
    params = []
    for i in range(len(dims) - 1):
        fan_in, fan_out = dims[i], dims[i + 1]
        key, kw, kb = jax.random.split(key, 3)
        bound = 1.0 / (fan_in ** 0.5)
        # stored as (in, out): transpose of PyTorch's (out, in) weight
        w = jax.random.uniform(kw, (fan_in, fan_out), jnp.float32, -bound, bound)
        b = jax.random.uniform(kb, (fan_out,), jnp.float32, -bound, bound)
        params.append((w, b))
    return params


if __name__ == "__main__":
    batch = 8
    in_features = 128   # small synthetic board encoding size
    out_features = 128  # small synthetic move-logit size

    key = jax.random.PRNGKey(0)
    params = init_params(key, in_features, out_features)
    prepared = prepare_params(params)   # one-time padding, outside the fwd path

    kx = jax.random.fold_in(key, 123)
    x = jax.random.uniform(kx, (batch, in_features), jnp.float32)

    out = imitation_model_forward(x, prepared, out_features)
    out = jax.block_until_ready(out)
    assert out.shape == (batch, out_features)

    # Pure-JAX reference check
    ref = x
    for i, (w, b) in enumerate(params):
        ref = ref @ w + b
        if i < len(params) - 1:
            ref = jnp.maximum(ref, 0.0)
    rel_err = float(jnp.max(jnp.abs(out - ref)) / (jnp.max(jnp.abs(ref)) + 1e-6))
    assert rel_err < 1e-3, f"rel_err={rel_err}"

    print("KERNEL_OK")
</pallas_src>

<mosaic_0001>
module attributes {stable_mosaic.version = 11 : i64} {
  func.func @_linear_kernel(%arg0: i32, %arg1: i32, %arg2: memref<8x128xf32, #tpu.memory_space<vmem>>, %arg3: memref<128x1024xf32, #tpu.memory_space<vmem>>, %arg4: memref<1x1024xf32, #tpu.memory_space<vmem>>, %arg5: memref<8x1024xf32, #tpu.memory_space<vmem>>, %arg6: memref<8x1024xf32, #tpu.memory_space<vmem>>) attributes {dimension_semantics = [#tpu.dimension_semantics<parallel>, #tpu.dimension_semantics<arbitrary>], iteration_bounds = array<i64: 20, 1>, scalar_prefetch = 0 : i64, scratch_operands = 1 : i64, tpu.core_type = #tpu.core_type<tc>, window_params = [{pipeline_mode = #tpu.pipeline_mode<synchronous>, transform_indices = @transform_0, window_bounds = array<i64: 8, 128>}, {transform_indices = @transform_1, window_bounds = array<i64: 128, 1024>}, {transform_indices = @transform_2, window_bounds = array<i64: 1, 1024>}, {transform_indices = @transform_3, window_bounds = array<i64: 8, 1024>}]} {
    %c0_i32 = arith.constant 0 : i32
    %0 = arith.cmpi eq, %arg1, %c0_i32 : i32
    %1 = arith.extui %0 : i1 to i32
    %c0_i32_0 = arith.constant 0 : i32
    %2 = arith.cmpi ne, %1, %c0_i32_0 : i32
    scf.if %2 {
      %cst_9 = arith.constant 0.000000e+00 : f32
      %15 = vector.broadcast %cst_9 : f32 to vector<8x1024xf32>
      %c0_10 = arith.constant 0 : index
      %c0_11 = arith.constant 0 : index
      %16 = vector.load %arg6[%c0_10, %c0_11] : memref<8x1024xf32, #tpu.memory_space<vmem>>, vector<8x1024xf32>
      tpu.vector_store %arg6[%c0_10, %c0_11], %15 {strides = array<i32>} : memref<8x1024xf32, #tpu.memory_space<vmem>>, vector<8x1024xf32>,
    } else {
    }
    %c128_i32 = arith.constant 128 : i32
    %3 = arith.muli %arg1, %c128_i32 : i32
    %4 = tpu.assume_multiple %3, 128 : i32
    %c0 = arith.constant 0 : index
    %5 = arith.index_cast %4 : i32 to index
    %6 = vector.load %arg2[%c0, %5] : memref<8x128xf32, #tpu.memory_space<vmem>>, vector<8x128xf32>
    %c0_1 = arith.constant 0 : index
    %c0_2 = arith.constant 0 : index
    %7 = vector.load %arg6[%c0_1, %c0_2] : memref<8x1024xf32, #tpu.memory_space<vmem>>, vector<8x1024xf32>
    %c0_3 = arith.constant 0 : index
    %c0_4 = arith.constant 0 : index
    %8 = vector.load %arg3[%c0_3, %c0_4] : memref<128x1024xf32, #tpu.memory_space<vmem>>, vector<128x1024xf32>
    %cst = arith.constant dense<0.000000e+00> : vector<8x1024xf32>
    %9 = tpu.matmul %6, %8, %cst {dimension_numbers = #tpu.dot_dimension_numbers<[1], [0], [0], [1], [0, 0, 1, 1], [], []>} : vector<8x128xf32>, vector<128x1024xf32>, vector<8x1024xf32> -> vector<8x1024xf32>
    %10 = arith.addf %7, %9 : vector<8x1024xf32>
    %c0_5 = arith.constant 0 : index
    %c0_6 = arith.constant 0 : index
    %11 = vector.load %arg6[%c0_5, %c0_6] : memref<8x1024xf32, #tpu.memory_space<vmem>>, vector<8x1024xf32>
    tpu.vector_store %arg6[%c0_5, %c0_6], %10 {strides = array<i32>} : memref<8x1024xf32, #tpu.memory_space<vmem>>, vector<8x1024xf32>,
    %c0_i32_7 = arith.constant 0 : i32
    %12 = arith.cmpi eq, %arg1, %c0_i32_7 : i32
    %13 = arith.extui %12 : i1 to i32
    %c0_i32_8 = arith.constant 0 : i32
    %14 = arith.cmpi ne, %13, %c0_i32_8 : i32
    scf.if %14 {
      %c0_9 = arith.constant 0 : index
      %c0_10 = arith.constant 0 : index
      %15 = vector.load %arg6[%c0_9, %c0_10] : memref<8x1024xf32, #tpu.memory_space<vmem>>, vector<8x1024xf32>
      %c0_11 = arith.constant 0 : index
      %c0_12 = arith.constant 0 : index
      %16 = vector.load %arg4[%c0_11, %c0_12] : memref<1x1024xf32, #tpu.memory_space<vmem>>, vector<1x1024xf32>
      %17 = vector.broadcast %16 : vector<1x1024xf32> to vector<8x1024xf32>
      %18 = arith.addf %15, %17 : vector<8x1024xf32>
      %cst_13 = arith.constant 0.000000e+00 : f32
      %19 = vector.broadcast %cst_13 : f32 to vector<8x1024xf32>
      %20 = arith.maximumf %18, %19 : vector<8x1024xf32>
      %c0_14 = arith.constant 0 : index
      %c0_15 = arith.constant 0 : index
      %21 = vector.load %arg5[%c0_14, %c0_15] : memref<8x1024xf32, #tpu.memory_space<vmem>>, vector<8x1024xf32>
      tpu.vector_store %arg5[%c0_14, %c0_15], %20 {strides = array<i32>} : memref<8x1024xf32, #tpu.memory_space<vmem>>, vector<8x1024xf32>,
    } else {
    }
    return
  }
  func.func @transform_0(%arg0: i32, %arg1: i32) -> (i32, i32) {
    %c0_i32 = arith.constant 0 : i32
    %c0_i32_0 = arith.constant 0 : i32
    %c0_i32_1 = arith.constant 0 : i32
    return %c0_i32, %c0_i32_0 : i32, i32
  }
  func.func @transform_1(%arg0: i32, %arg1: i32) -> (i32, i32) {
    %c0_i32 = arith.constant 0 : i32
    return %arg1, %arg0 : i32, i32
  }
  func.func @transform_2(%arg0: i32, %arg1: i32) -> (i32, i32) {
    %c0_i32 = arith.constant 0 : i32
    %c0_i32_0 = arith.constant 0 : i32
    return %c0_i32, %arg0 : i32, i32
  }
  func.func @transform_3(%arg0: i32, %arg1: i32) -> (i32, i32) {
    %c0_i32 = arith.constant 0 : i32
    %c0_i32_0 = arith.constant 0 : i32
    return %c0_i32, %arg0 : i32, i32
  }
}

</mosaic_0001>

<bundles_post_ra>
// kernel: tpu_custom_call.1
= control target key start
LH: loop header
LB: loop body
LE: loop exit
PB: predicated region body
PF: predicated region fallthrough
CT: control target
= control target key end

     0   :  { %8 = vsyncpa [#allocation4], 0  ;;  %s1383_s0 = inlined_call_operand.hbm [shape: f32[8,128], index: 0, kind: input, shape index: {}]   ;;  %s1384_s1 = inlined_call_operand.hbm [shape: f32[128,20480], index: 1, kind: input, shape index: {}]   ;;  %s1385_s2 = inlined_call_operand.hbm [shape: f32[1,20480], index: 2, kind: input, shape index: {}]   ;;  %s1386_s3 = inlined_call_operand.hbm [shape: f32[8,20480], index: 3, kind: output, shape index: {}]  }
   0x1   :  { %9 = vsyncpa [#allocation7], 0 }
   0x2   :  { %11 = vsyncpa [#allocation7 + $0x1], 0 }
   0x3   :  { %12 = vsyncpa [#allocation5], 0 }
   0x4   :  { %14 = vsyncpa [#allocation5 + $0x1], 0  ;;  %s1081_s12 = smov 0   ;;  %s1083_s13 = smov 0  }
   0x5   :  { %s1085_s14 = smov 0   ;;  %s1087_s15 = smov 0  }
   0x6   :  { %s1089_s16 = smov 0   ;;  %s1091_s17 = smov 0  }
   0x7 LB: > { %s32_s18 = sadd.s32 1, %s1051_s16  ;;  %s62_s19 = sadd.s32 1, %s1043_s14  ;;  %s1055_s17 = sphi %s1091_s17, %s20_s17   ;;  %s1051_s16 = sphi %s1089_s16, %s1397_s16   ;;  %s1047_s15 = sphi %s1087_s15, %s1396_s15   ;;  %s1043_s14 = sphi %s1085_s14, %s1395_s14   ;;  %s1039_s13 = sphi %s1083_s13, %s1394_s13   ;;  %s1035_s12 = sphi %s1081_s12, %s1393_s12  }
   0x8   : > { %p34_p0 = scmp.ge.s32.totalorder %s32_s18, 20  ;;  %p69_p1 = scmp.ne.s32.totalorder %s1043_s14, %s1039_s13 }
   0x9   : > { %p70_p2 = scmp.eq.s32.totalorder %s1055_s17, 0  ;;  %p824_p4 = scmp.lt.s32.totalorder %s1055_s17, 20 }
   0xa   : > { %s1399_s18 = smov (%p34_p0, %s32_s18), 0  ;;  %s163_s22 = sand.u32 1, %s1055_s17  }
   0xb   : > { %p1121_p3 = por %p70_p2, %p69_p1  ;;  %s58_s21 = ssub.s32 %s1051_s16, %s1399_s18 }
   0xc   : > { %p60_p5 = scmp.eq.s32.totalorder %s58_s21, 0  ;;  %s165_s23 = sand.u32 1, %s1043_s14  }
   0xd   : > { %s796_s24 = sshll.u32 %s1051_s16, 6  ;;  %s781_s26 = sshll.u32 %s165_s23, 10 }
   0xe   : > { %s1132_s25 = scalar_select %p60_p5, %s1043_s14, %s62_s19  }
   0xf   : > { %s175_s29 = scalar_lea.hbm %s1384_s1, %s796_s24  ;;  %s167_s4 = scalar_lea.vmem [#allocation6], %s781_s26 }
  0x10   : > { %s176_s30 = sshll.u32 %s175_s29, 4  ;;  %s178_s5 = sshll.u32 %s167_s4, 4  ;;  %s177_s30 = int_to_ptr.hbm [resolvable:$true] %s176_s30  ;;  %s179_s5 = int_to_ptr.vmem [resolvable:$true] %s178_s5 }
  0x11   : > { %p1143_p6 = pnand %p824_p4, %p1121_p3  ;;  %s1147_s7 = scalar_lea.sflag [#allocation7], %s163_s22 }
  0x12   : > { %s1057_s8 = smov 20480   ;;  %s1058_s9 = smov 1024  }
  0x13   : > { %s1059_s10 = smov 64   ;;  %s1153_s11 = sadd.s32 4294967295, %s1055_s17  }
  0x14   : > { %815 = dma.hbm_to_vmem [thread:$0]  (!%p1143_p6), %s177_s30, 16384, %s179_s5, %s1147_s7, %s1057_s8, %s1058_s9, %s1059_s10  }
  0x15   : > { %s777_s19 = sadd.s32 4294967294, %s1055_s17   ;;  %p75_p7 = scmp.ne.s32.totalorder %s1039_s13, %s1035_s12 }
  0x16   : > { %p76_p8 = scmp.eq.s32.totalorder %s1153_s11, 0  ;;  %p125_p9 = scmp.eq.s32.totalorder %s1153_s11, 19 }
  0x17   : > { %p131_p10 = scmp.eq.s32.totalorder %s777_s19, 19  ;;  %p778_p12 = scmp.ge.s32.totalorder %s1055_s17, 1 }
  0x18   : > { %p1162_p11 = por %p76_p8, %p75_p7  ;;  %p1170_p13 = por %p125_p9, %p69_p1 }
  0x19   : > { %p1174_p0 = por %p131_p10, %p75_p7  ;;  %p138_p2 = scmp.lt.s32.totalorder %s1055_s17, 21 }
  0x1a   : > { %s150_s27 = sshll.u32 %s1383_s0, 4  ;;  %s1060_s29 = smov [#allocation3]   ;;  %s151_s27 = int_to_ptr.hbm [resolvable:$true] %s150_s27 }
  0x1b   : > { %p1182_p3 = pnand %p778_p12, %p138_p2  ;;  %s152_s30 = sshll.u32 %s1060_s29, 4  ;;  %s153_s30 = int_to_ptr.vmem [resolvable:$true] %s152_s30 }
  0x1c   : > { %s784_s4 = sshll.u32 %s165_s23, 3  ;;  %s785_s5 = sshll.u32 %s1051_s16, 3 }
  0x1d   : > { %p808_p1 = pneg %p1182_p3  ;;  %s196_s10 = scalar_lea.hbm %s1385_s2, %s785_s5 }
  0x1e   : > { %s198_s19 = sshll.u32 %s196_s10, 4  ;;  %s192_s24 = scalar_lea.vmem [#allocation8], %s784_s4  ;;  %s199_s19 = int_to_ptr.hbm [resolvable:$true] %s198_s19 }
  0x1f   : > { %p809_p4 = pnand %p808_p1, %p76_p8  ;;  %s200_s26 = sshll.u32 %s192_s24, 4  ;;  %s201_s26 = int_to_ptr.vmem [resolvable:$true] %s200_s26 }
  0x20   : > { %818 = dma.hbm_to_vmem [thread:$0]  (!%p1143_p6), %s199_s19, 128, %s201_s26, %s1147_s7  }
  0x21   : > { %811 = dma.hbm_to_vmem [thread:$0]  (!%p809_p4), %s151_s27, 128, %s153_s30, [#allocation4]  }
  0x22   : > { %209 = sbr.rel (%p1182_p3) target bundleno = 250 (0xfa), region = 32 }
  0x27   : > { %1022 = dma.done.wait (%p76_p8), [#allocation4], 128  }
  0x28   : > { %1024 = vsyncadd (%p76_p8), [#allocation4], 4294967168  ;;  %s216_s23 = sand.u32 1, %s1153_s11   ;;  %s1207_s29 = sand.u32 1, %s1039_s13  }
  0x29   : > { %s788_s27 = sshll.u32 %s1207_s29, 10  ;;  %s217_s30 = scalar_lea.sflag [#allocation7], %s216_s23 }
  0x2a   : > { %s1210_s6 = scalar_lea.vmem [#allocation6], %s788_s27 }
  0x2b   : > { %1026 = dma.done.wait (%p1162_p11), %s217_s30, 16512  }
  0x2c   : > { %1028 = vsyncadd (%p1162_p11), %s217_s30, 4294950784  ;;  %v410_v0 = vld [vmem:[%s1210_s6 + $0x3d0] sm:$0xff]  ;;  %v411_v1 = vld [vmem:[%s1210_s6 + $0x3d8] sm:$0xff]  ;;  %s789_s7 = sshll.u32 %s1207_s29, 3  ;;  %s790_s20 = sshll.u32 %s1207_s29, 6 }
  0x2d   : > { %v402_v2 = vld [vmem:[%s1210_s6 + $0x390] sm:$0xff]  ;;  %456 = vmatpush.msra.mxu2 %v410_v0  ;;  %476 = vmatpush.msra.mxu3 %v411_v1  ;;  %v403_v3 = vld [vmem:[%s1210_s6 + $0x398] sm:$0xff]  ;;  %v408_v6 = vld [vmem:[%s1210_s6 + $0x3c0] sm:$0xff]  ;;  %s230_s11 = scalar_lea.vmem [#allocation8], %s789_s7  ;;  %s258_s28 = scalar_lea.vmem [#allocation9], %s790_s20 }
  0x2e   : > { %v394_v4 = vld [vmem:[%s1210_s6 + $0x350] sm:$0xff]  ;;  %v395_v5 = vld [vmem:[%s1210_s6 + $0x358] sm:$0xff]  ;;  %v409_v7 = vld [vmem:[%s1210_s6 + $0x3c8] sm:$0xff]  ;;  %416 = vmatpush.msra.mxu0 %v408_v6  ;;  %s797_s4 = sshll.u32 %s1047_s15, 6  ;;  %s659_s15 = sshll.u32 %s258_s28, 4  ;;  %s660_s15 = int_to_ptr.vmem [resolvable:$true] %s659_s15 }
  0x2f   : > { %457 = vmatpush.msra.mxu2 %v402_v2  ;;  %477 = vmatpush.msra.mxu3 %v403_v3  ;;  %v400_v8 = vld [vmem:[%s1210_s6 + $0x380] sm:$0xff]  ;;  %v401_v9 = vld [vmem:[%s1210_s6 + $0x388] sm:$0xff]  ;;  %v386_v10 = vld [vmem:[%s1210_s6 + $0x310] sm:$0xff]  ;;  %s657_s9 = scalar_lea.hbm %s1386_s3, %s797_s4  ;;  %s646_s19 = scalar_lea.sflag [#allocation5], %s1207_s29 }
  0x30   : > { %436 = vmatpush.msra.mxu1 %v409_v7  ;;  %v387_v11 = vld [vmem:[%s1210_s6 + $0x318] sm:$0xff]  ;;  %v392_v12 = vld [vmem:[%s1210_s6 + $0x340] sm:$0xff]  ;;  %v393_v13 = vld [vmem:[%s1210_s6 + $0x348] sm:$0xff]  ;;  %417 = vmatpush.msra.mxu0 %v400_v8  ;;  %s661_s10 = sshll.u32 %s657_s9, 4  ;;  %s989_s30 = scalar_lea.hbm %s1386_s3, 1280  ;;  %s662_s10 = int_to_ptr.hbm [resolvable:$true] %s661_s10 }
  0x31   : > { %458 = vmatpush.msra.mxu2 %v394_v4  ;;  %478 = vmatpush.msra.mxu3 %v395_v5  ;;  %v378_v14 = vld [vmem:[%s1210_s6 + $0x2d0] sm:$0xff]  ;;  %v379_v15 = vld [vmem:[%s1210_s6 + $0x2d8] sm:$0xff]  ;;  %v384_v16 = vld [vmem:[%s1210_s6 + $0x300] sm:$0xff]  ;;  %s983_s24 = sshra.s32 %s662_s10, 4  ;;  %s984_s24 = int_to_ptr.hbm [resolvable:$true] %s983_s24 }
  0x32   : > { %437 = vmatpush.msra.mxu1 %v401_v9  ;;  %v385_v17 = vld [vmem:[%s1210_s6 + $0x308] sm:$0xff]  ;;  %418 = vmatpush.msra.mxu0 %v392_v12  ;;  %v370_v18 = vld [vmem:[%s1210_s6 + $0x290] sm:$0xff]  ;;  %v371_v19 = vld [vmem:[%s1210_s6 + $0x298] sm:$0xff]  ;;  %s985_s26 = scalar_lea.hbm %s984_s24, 64  ;;  %p990_p8 = scmp.lt.s32.totalorder %s984_s24, %s1386_s3 }
  0x33   : > { %459 = vmatpush.msra.mxu2 %v386_v10  ;;  %479 = vmatpush.msra.mxu3 %v387_v11  ;;  %v376_v20 = vld [vmem:[%s1210_s6 + $0x2c0] sm:$0xff]  ;;  %v377_v21 = vld [vmem:[%s1210_s6 + $0x2c8] sm:$0xff]  ;;  %v362_v22 = vld [vmem:[%s1210_s6 + $0x250] sm:$0xff]  ;;  %p986_p5 = scmp.ne.s32.totalorder %s984_s24, %s985_s26  ;;  %p991_p9 = scmp.lt.s32.totalorder %s989_s30, %s985_s26 }
  0x34   : > { %438 = vmatpush.msra.mxu1 %v393_v13  ;;  %419 = vmatpush.msra.mxu0 %v384_v16  ;;  %v363_v23 = vld [vmem:[%s1210_s6 + $0x258] sm:$0xff]  ;;  %v368_v24 = vld [vmem:[%s1210_s6 + $0x280] sm:$0xff]  ;;  %v369_v25 = vld [vmem:[%s1210_s6 + $0x288] sm:$0xff] }
  0x35   : > { %460 = vmatpush.msra.mxu2 %v378_v14  ;;  %480 = vmatpush.msra.mxu3 %v379_v15  ;;  %v354_v26 = vld [vmem:[%s1210_s6 + $0x210] sm:$0xff]  ;;  %v355_v27 = vld [vmem:[%s1210_s6 + $0x218] sm:$0xff]  ;;  %v360_v28 = vld [vmem:[%s1210_s6 + $0x240] sm:$0xff]  ;;  %p987_p6 = pnand %p986_p5, %p1170_p13  ;;  %p992_p10 = por %p991_p9, %p990_p8 }
  0x36   : > { %439 = vmatpush.msra.mxu1 %v385_v17  ;;  %420 = vmatpush.msra.mxu0 %v376_v20  ;;  %v361_v29 = vld [vmem:[%s1210_s6 + $0x248] sm:$0xff]  ;;  %v346_v30 = vld [vmem:[%s1210_s6 + $0x1d0] sm:$0xff]  ;;  %v347_v31 = vld [vmem:[%s1210_s6 + $0x1d8] sm:$0xff] }
  0x37   : > { %461 = vmatpush.msra.mxu2 %v370_v18  ;;  %481 = vmatpush.msra.mxu3 %v371_v19  ;;  %v352_v32 = vld [vmem:[%s1210_s6 + $0x200] sm:$0xff]  ;;  %v353_v33 = vld [vmem:[%s1210_s6 + $0x208] sm:$0xff]  ;;  %v338_v34 = vld [vmem:[%s1210_s6 + $0x190] sm:$0xff]  ;;  %p988_p7 = pneg %p987_p6 }
  0x38   : > { %440 = vmatpush.msra.mxu1 %v377_v21  ;;  %421 = vmatpush.msra.mxu0 %v368_v24  ;;  %v339_v35 = vld [vmem:[%s1210_s6 + $0x198] sm:$0xff]  ;;  %v344_v36 = vld [vmem:[%s1210_s6 + $0x1c0] sm:$0xff]  ;;  %v345_v37 = vld [vmem:[%s1210_s6 + $0x1c8] sm:$0xff] }
  0x39   : > { %462 = vmatpush.msra.mxu2 %v362_v22  ;;  %482 = vmatpush.msra.mxu3 %v363_v23  ;;  %v330_v38 = vld [vmem:[%s1210_s6 + $0x150] sm:$0xff]  ;;  %v331_v39 = vld [vmem:[%s1210_s6 + $0x158] sm:$0xff]  ;;  %v336_v40 = vld [vmem:[%s1210_s6 + $0x180] sm:$0xff]  ;;  %p993_p11 = pnand %p992_p10, %p988_p7 }
  0x3a   : > { %441 = vmatpush.msra.mxu1 %v369_v25  ;;  %422 = vmatpush.msra.mxu0 %v360_v28  ;;  %v337_v41 = vld [vmem:[%s1210_s6 + $0x188] sm:$0xff]  ;;  %v322_v42 = vld [vmem:[%s1210_s6 + $0x110] sm:$0xff]  ;;  %v323_v43 = vld [vmem:[%s1210_s6 + $0x118] sm:$0xff] }
  0x3b   : > { %463 = vmatpush.msra.mxu2 %v354_v26  ;;  %483 = vmatpush.msra.mxu3 %v355_v27  ;;  %v328_v44 = vld [vmem:[%s1210_s6 + $0x140] sm:$0xff]  ;;  %v329_v45 = vld [vmem:[%s1210_s6 + $0x148] sm:$0xff]  ;;  %v314_v46 = vld [vmem:[%s1210_s6 + $0xd0] sm:$0xff] }
  0x3c   : > { %442 = vmatpush.msra.mxu1 %v361_v29  ;;  %423 = vmatpush.msra.mxu0 %v352_v32  ;;  %v315_v47 = vld [vmem:[%s1210_s6 + $0xd8] sm:$0xff]  ;;  %v320_v48 = vld [vmem:[%s1210_s6 + $0x100] sm:$0xff]  ;;  %v321_v49 = vld [vmem:[%s1210_s6 + $0x108] sm:$0xff] }
  0x3d   : > { %464 = vmatpush.msra.mxu2 %v346_v30  ;;  %484 = vmatpush.msra.mxu3 %v347_v31  ;;  %v306_v50 = vld [vmem:[%s1210_s6 + $0x90] sm:$0xff]  ;;  %v307_v51 = vld [vmem:[%s1210_s6 + $0x98] sm:$0xff]  ;;  %v312_v52 = vld [vmem:[%s1210_s6 + $0xc0] sm:$0xff] }
  0x3e   : > { %443 = vmatpush.msra.mxu1 %v353_v33  ;;  %424 = vmatpush.msra.mxu0 %v344_v36  ;;  %v313_v53 = vld [vmem:[%s1210_s6 + $0xc8] sm:$0xff]  ;;  %v298_v54 = vld [vmem:[%s1210_s6 + $0x50] sm:$0xff]  ;;  %v299_v55 = vld [vmem:[%s1210_s6 + $0x58] sm:$0xff] }
  0x3f   : > { %465 = vmatpush.msra.mxu2 %v338_v34  ;;  %485 = vmatpush.msra.mxu3 %v339_v35  ;;  %v304_v56 = vld [vmem:[%s1210_s6 + $0x80] sm:$0xff]  ;;  %v305_v57 = vld [vmem:[%s1210_s6 + $0x88] sm:$0xff]  ;;  %v290_v58 = vld [vmem:[%s1210_s6 + $0x10] sm:$0xff] }
  0x40   : > { %444 = vmatpush.msra.mxu1 %v345_v37  ;;  %425 = vmatpush.msra.mxu0 %v336_v40  ;;  %v291_v59 = vld [vmem:[%s1210_s6 + $0x18] sm:$0xff]  ;;  %v414_v60 = vld [vmem:[%s1210_s6 + $0x3f0] sm:$0xff]  ;;  %v296_v62 = vld [vmem:[%s1210_s6 + $0x40] sm:$0xff] }
  0x41   : > { %466 = vmatpush.msra.mxu2 %v330_v38  ;;  %486 = vmatpush.msra.mxu3 %v331_v39  ;;  %v415_v61 = vld [vmem:[%s1210_s6 + $0x3f8] sm:$0xff]  ;;  %v297_v63 = vld [vmem:[%s1210_s6 + $0x48] sm:$0xff]  ;;  %v406_v0 = vld [vmem:[%s1210_s6 + $0x3b0] sm:$0xff] }
  0x42   : > { %445 = vmatpush.msra.mxu1 %v337_v41  ;;  %426 = vmatpush.msra.mxu0 %v328_v44  ;;  %v407_v1 = vld [vmem:[%s1210_s6 + $0x3b8] sm:$0xff]  ;;  %v288_v2 = vld [vmem:[%s1210_s6] sm:$0xff]  ;;  %v289_v3 = vld [vmem:[%s1210_s6 + $0x8] sm:$0xff] }
  0x43   : > { %467 = vmatpush.msra.mxu2 %v322_v42  ;;  %487 = vmatpush.msra.mxu3 %v323_v43  ;;  %v398_v4 = vld [vmem:[%s1210_s6 + $0x370] sm:$0xff]  ;;  %v399_v5 = vld [vmem:[%s1210_s6 + $0x378] sm:$0xff]  ;;  %v412_v6 = vld [vmem:[%s1210_s6 + $0x3e0] sm:$0xff] }
  0x44   : > { %446 = vmatpush.msra.mxu1 %v329_v45  ;;  %427 = vmatpush.msra.mxu0 %v320_v48  ;;  %v413_v7 = vld [vmem:[%s1210_s6 + $0x3e8] sm:$0xff]  ;;  %v390_v8 = vld [vmem:[%s1210_s6 + $0x330] sm:$0xff]  ;;  %v391_v9 = vld [vmem:[%s1210_s6 + $0x338] sm:$0xff] }
  0x45   : > { %468 = vmatpush.msra.mxu2 %v314_v46  ;;  %488 = vmatpush.msra.mxu3 %v315_v47  ;;  %v404_v10 = vld [vmem:[%s1210_s6 + $0x3a0] sm:$0xff]  ;;  %v405_v11 = vld [vmem:[%s1210_s6 + $0x3a8] sm:$0xff]  ;;  %v382_v12 = vld [vmem:[%s1210_s6 + $0x2f0] sm:$0xff] }
  0x46   : > { %447 = vmatpush.msra.mxu1 %v321_v49  ;;  %428 = vmatpush.msra.mxu0 %v312_v52  ;;  %v383_v13 = vld [vmem:[%s1210_s6 + $0x2f8] sm:$0xff]  ;;  %v396_v14 = vld [vmem:[%s1210_s6 + $0x360] sm:$0xff]  ;;  %v397_v15 = vld [vmem:[%s1210_s6 + $0x368] sm:$0xff] }
  0x47   : > { %469 = vmatpush.msra.mxu2 %v306_v50  ;;  %489 = vmatpush.msra.mxu3 %v307_v51  ;;  %v374_v16 = vld [vmem:[%s1210_s6 + $0x2b0] sm:$0xff]  ;;  %v375_v17 = vld [vmem:[%s1210_s6 + $0x2b8] sm:$0xff]  ;;  %v388_v18 = vld [vmem:[%s1210_s6 + $0x320] sm:$0xff] }
  0x48   : > { %448 = vmatpush.msra.mxu1 %v313_v53  ;;  %429 = vmatpush.msra.mxu0 %v304_v56  ;;  %v389_v19 = vld [vmem:[%s1210_s6 + $0x328] sm:$0xff]  ;;  %v366_v20 = vld [vmem:[%s1210_s6 + $0x270] sm:$0xff]  ;;  %v367_v21 = vld [vmem:[%s1210_s6 + $0x278] sm:$0xff] }
  0x49   : > { %470 = vmatpush.msra.mxu2 %v298_v54  ;;  %490 = vmatpush.msra.mxu3 %v299_v55  ;;  %v380_v22 = vld [vmem:[%s1210_s6 + $0x2e0] sm:$0xff]  ;;  %v381_v23 = vld [vmem:[%s1210_s6 + $0x2e8] sm:$0xff]  ;;  %v358_v24 = vld [vmem:[%s1210_s6 + $0x230] sm:$0xff] }
  0x4a   : > { %449 = vmatpush.msra.mxu1 %v305_v57  ;;  %430 = vmatpush.msra.mxu0 %v296_v62  ;;  %v359_v25 = vld [vmem:[%s1210_s6 + $0x238] sm:$0xff]  ;;  %v372_v26 = vld [vmem:[%s1210_s6 + $0x2a0] sm:$0xff]  ;;  %v373_v27 = vld [vmem:[%s1210_s6 + $0x2a8] sm:$0xff] }
  0x4b   : > { %471 = vmatpush.msra.mxu2 %v290_v58  ;;  %491 = vmatpush.msra.mxu3 %v291_v59  ;;  %v350_v28 = vld [vmem:[%s1210_s6 + $0x1f0] sm:$0xff]  ;;  %v351_v29 = vld [vmem:[%s1210_s6 + $0x1f8] sm:$0xff]  ;;  %v364_v30 = vld [vmem:[%s1210_s6 + $0x260] sm:$0xff] }
  0x4c   : > { %450 = vmatpush.msra.mxu1 %v297_v63  ;;  %431 = vmatpush.msra.mxu0 %v288_v2  ;;  %v365_v31 = vld [vmem:[%s1210_s6 + $0x268] sm:$0xff]  ;;  %v342_v32 = vld [vmem:[%s1210_s6 + $0x1b0] sm:$0xff]  ;;  %v343_v33 = vld [vmem:[%s1210_s6 + $0x1b8] sm:$0xff] }
  0x4d   : > { %536 = vmatpush.msrb.mxu2 %v414_v60  ;;  %556 = vmatpush.msrb.mxu3 %v415_v61  ;;  %v356_v34 = vld [vmem:[%s1210_s6 + $0x220] sm:$0xff]  ;;  %v357_v35 = vld [vmem:[%s1210_s6 + $0x228] sm:$0xff]  ;;  %v334_v36 = vld [vmem:[%s1210_s6 + $0x170] sm:$0xff] }
  0x4e   : > { %451 = vmatpush.msra.mxu1 %v289_v3  ;;  %496 = vmatpush.msrb.mxu0 %v412_v6  ;;  %v335_v37 = vld [vmem:[%s1210_s6 + $0x178] sm:$0xff]  ;;  %v348_v38 = vld [vmem:[%s1210_s6 + $0x1e0] sm:$0xff]  ;;  %v349_v39 = vld [vmem:[%s1210_s6 + $0x1e8] sm:$0xff] }
  0x4f   : > { %537 = vmatpush.msrb.mxu2 %v406_v0  ;;  %557 = vmatpush.msrb.mxu3 %v407_v1  ;;  %v326_v40 = vld [vmem:[%s1210_s6 + $0x130] sm:$0xff]  ;;  %v327_v41 = vld [vmem:[%s1210_s6 + $0x138] sm:$0xff]  ;;  %v340_v43 = vld [vmem:[%s1210_s6 + $0x1a0] sm:$0xff] }
  0x50   : > { %516 = vmatpush.msrb.mxu1 %v413_v7  ;;  %497 = vmatpush.msrb.mxu0 %v404_v10  ;;  %v279_v42 = vld [vmem:[#allocation3] sm:$0xff]  ;;  %v341_v44 = vld [vmem:[%s1210_s6 + $0x1a8] sm:$0xff]  ;;  %v318_v45 = vld [vmem:[%s1210_s6 + $0xf0] sm:$0xff] }
  0x51   : > { %538 = vmatpush.msrb.mxu2 %v398_v4  ;;  %558 = vmatpush.msrb.mxu3 %v399_v5  ;;  %v319_v46 = vld [vmem:[%s1210_s6 + $0xf8] sm:$0xff]  ;;  %v332_v47 = vld [vmem:[%s1210_s6 + $0x160] sm:$0xff]  ;;  %v333_v48 = vld [vmem:[%s1210_s6 + $0x168] sm:$0xff] }
  0x52   : > { %517 = vmatpush.msrb.mxu1 %v405_v11  ;;  %498 = vmatpush.msrb.mxu0 %v396_v14  ;;  %v310_v49 = vld [vmem:[%s1210_s6 + $0xb0] sm:$0xff]  ;;  %v311_v50 = vld [vmem:[%s1210_s6 + $0xb8] sm:$0xff]  ;;  %v324_v51 = vld [vmem:[%s1210_s6 + $0x120] sm:$0xff] }
  0x53   : > { %539 = vmatpush.msrb.mxu2 %v390_v8  ;;  %559 = vmatpush.msrb.mxu3 %v391_v9  ;;  %v325_v52 = vld [vmem:[%s1210_s6 + $0x128] sm:$0xff]  ;;  %v302_v53 = vld [vmem:[%s1210_s6 + $0x70] sm:$0xff]  ;;  %v303_v54 = vld [vmem:[%s1210_s6 + $0x78] sm:$0xff] }
  0x54   : > { %518 = vmatpush.msrb.mxu1 %v397_v15  ;;  %499 = vmatpush.msrb.mxu0 %v388_v18  ;;  %v316_v55 = vld [vmem:[%s1210_s6 + $0xe0] sm:$0xff]  ;;  %v317_v56 = vld [vmem:[%s1210_s6 + $0xe8] sm:$0xff]  ;;  %v294_v57 = vld [vmem:[%s1210_s6 + $0x30] sm:$0xff] }
  0x55   : > { %540 = vmatpush.msrb.mxu2 %v382_v12  ;;  %560 = vmatpush.msrb.mxu3 %v383_v13  ;;  %v295_v58 = vld [vmem:[%s1210_s6 + $0x38] sm:$0xff]  ;;  %v308_v59 = vld [vmem:[%s1210_s6 + $0xa0] sm:$0xff]  ;;  %v309_v60 = vld [vmem:[%s1210_s6 + $0xa8] sm:$0xff] }
  0x56   : > { %519 = vmatpush.msrb.mxu1 %v389_v19  ;;  %500 = vmatpush.msrb.mxu0 %v380_v22  ;;  %v300_v61 = vld [vmem:[%s1210_s6 + $0x60] sm:$0xff]  ;;  %v301_v62 = vld [vmem:[%s1210_s6 + $0x68] sm:$0xff] }
  0x57   : > { %541 = vmatpush.msrb.mxu2 %v374_v16  ;;  %561 = vmatpush.msrb.mxu3 %v375_v17  ;;  %v292_v63 = vld [vmem:[%s1210_s6 + $0x20] sm:$0xff]  ;;  %v293_v0 = vld [vmem:[%s1210_s6 + $0x28] sm:$0xff] }
  0x58   : > { %520 = vmatpush.msrb.mxu1 %v381_v23  ;;  %501 = vmatpush.msrb.mxu0 %v372_v26  ;;  %v603_v1 = vld [vmem:[%s230_s11] sm:$0xff] }
  0x59   : > { %542 = vmatpush.msrb.mxu2 %v366_v20  ;;  %562 = vmatpush.msrb.mxu3 %v367_v21  ;;  %v607_v2 = vperm.slane %v603_v1, 2  ;;  %v608_v3 = vperm.slane %v603_v1, 3  ;;  %v605_v4 = vperm.slane %v603_v1, 0  ;;  %v606_v5 = vperm.slane %v603_v1, 1 }
  0x5a   : > { %521 = vmatpush.msrb.mxu1 %v373_v27  ;;  %502 = vmatpush.msrb.mxu0 %v364_v30  ;;  %v609_v18 = vperm.slane %v603_v1, 4  ;;  %v610_v19 = vperm.slane %v603_v1, 5  ;;  %v611_v20 = vperm.slane %v603_v1, 6  ;;  %v612_v21 = vperm.slane %v603_v1, 7 }
  0x5b   : > { %543 = vmatpush.msrb.mxu2 %v358_v24  ;;  %563 = vmatpush.msrb.mxu3 %v359_v25 }
  0x5c   : > { %522 = vmatpush.msrb.mxu1 %v365_v31  ;;  %503 = vmatpush.msrb.mxu0 %v356_v34 }
  0x5d   : > { %544 = vmatpush.msrb.mxu2 %v350_v28  ;;  %564 = vmatpush.msrb.mxu3 %v351_v29 }
  0x5e   : > { %523 = vmatpush.msrb.mxu1 %v357_v35  ;;  %504 = vmatpush.msrb.mxu0 %v348_v38 }
  0x5f   : > { %545 = vmatpush.msrb.mxu2 %v342_v32  ;;  %565 = vmatpush.msrb.mxu3 %v343_v33 }
  0x60   : > { %524 = vmatpush.msrb.mxu1 %v349_v39  ;;  %472 = vmatmul.f32.vlgmr.msra.gmra.mxu2 %v279_v42 }
  0x61   : > { %546 = vmatpush.msrb.mxu2 %v334_v36  ;;  %566 = vmatpush.msrb.mxu3 %v335_v37 }
  0x62   : > { %492 = vmatmul.f32.vlgmr.msra.gmra.mxu3 %v279_v42  ;;  %505 = vmatpush.msrb.mxu0 %v340_v43 }
  0x63   : > { %547 = vmatpush.msrb.mxu2 %v326_v40  ;;  %567 = vmatpush.msrb.mxu3 %v327_v41 }
  0x64   : > { %525 = vmatpush.msrb.mxu1 %v341_v44  ;;  %506 = vmatpush.msrb.mxu0 %v332_v47 }
  0x65   : > { %548 = vmatpush.msrb.mxu2 %v318_v45  ;;  %568 = vmatpush.msrb.mxu3 %v319_v46 }
  0x66   : > { %526 = vmatpush.msrb.mxu1 %v333_v48  ;;  %507 = vmatpush.msrb.mxu0 %v324_v51 }
  0x67   : > { %549 = vmatpush.msrb.mxu2 %v310_v49  ;;  %569 = vmatpush.msrb.mxu3 %v311_v50 }
  0x68   : > { %527 = vmatpush.msrb.mxu1 %v325_v52  ;;  %432 = vmatmul.f32.vlgmr.msra.gmra.mxu0 %v279_v42 }
  0x69   : > { %550 = vmatpush.msrb.mxu2 %v302_v53  ;;  %570 = vmatpush.msrb.mxu3 %v303_v54 }
  0x6a   : > { %452 = vmatmul.f32.vlgmr.msra.gmra.mxu1 %v279_v42  ;;  %508 = vmatpush.msrb.mxu0 %v316_v55 }
  0x6b   : > { %528 = vmatpush.msrb.mxu1 %v317_v56  ;;  %551 = vmatpush.msrb.mxu2 %v294_v57 }
  0x6c   : > { %571 = vmatpush.msrb.mxu3 %v295_v58  ;;  %552 = vmatmul.f32.vlgmr.msrb.gmra.mxu2 %v279_v42 }
  0x6d   : > { %572 = vmatmul.f32.vlgmr.msrb.gmra.mxu3 %v279_v42  ;;  %509 = vmatpush.msrb.mxu0 %v308_v59 }
  0x6e   : > { %529 = vmatpush.msrb.mxu1 %v309_v60 }
  0x6f   : > { %510 = vmatpush.msrb.mxu0 %v300_v61 }
  0x70   : > { %530 = vmatpush.msrb.mxu1 %v301_v62 }
  0x71   : > { %511 = vmatpush.msrb.mxu0 %v292_v63 }
  0x72   : > { %531 = vmatpush.msrb.mxu1 %v293_v0  ;;  %512 = vmatmul.f32.vlgmr.msrb.gmra.mxu0 %v279_v42 }
  0x73   : > { %532 = vmatmul.f32.vlgmr.msrb.gmra.mxu1 %v279_v42 }
  0xe3   : > { %v473_v6 = vpop.f32.mrf.mxu2 }
  0xe4   : > { %v623_v10 = vadd.f32 %v607_v2, %v473_v6 }
  0xe5   : > { %v493_v7 = vpop.f32.mrf.mxu3  ;;  %v433_v8 = vpop.f32.mrf.mxu0 }
  0xe6   : > { %v624_v11 = vadd.f32 %v608_v3, %v493_v7  ;;  %v621_v12 = vadd.f32 %v605_v4, %v433_v8  ;;  %v631_v14 = vmax.f32 %v623_v10, 0.0 }
  0xe7   : > { %v453_v9 = vpop.f32.mrf.mxu1 }
  0xe8   : > { %v622_v13 = vadd.f32 %v606_v5, %v453_v9  ;;  %v629_v15 = vmax.f32 %v621_v12, 0.0  ;;  %v632_v17 = vmax.f32 %v624_v11, 0.0  ;;  %639 = vst [vmem:[%s258_s28 + $0x10] sm:$0xff] %v631_v14 }
  0xea   : > { %v630_v16 = vmax.f32 %v622_v13, 0.0  ;;  %637 = vst [vmem:[%s258_s28] sm:$0xff] %v629_v15 }
  0xeb   : > { %640 = vst [vmem:[%s258_s28 + $0x18] sm:$0xff] %v632_v17 }
  0xec   : > { %638 = vst [vmem:[%s258_s28 + $0x8] sm:$0xff] %v630_v16 }
  0xef   : > { %v513_v22 = vpop.f32.mrf.mxu0  ;;  %v553_v26 = vpop.f32.mrf.mxu2 }
  0xf0   : > { %v533_v23 = vpop.f32.mrf.mxu1  ;;  %v625_v24 = vadd.f32 %v609_v18, %v513_v22  ;;  %v573_v27 = vpop.f32.mrf.mxu3  ;;  %v627_v28 = vadd.f32 %v611_v20, %v553_v26 }
  0xf1   : > { %v626_v25 = vadd.f32 %v610_v19, %v533_v23  ;;  %v628_v29 = vadd.f32 %v612_v21, %v573_v27 }
  0xf2   : > { %v633_v30 = vmax.f32 %v625_v24, 0.0  ;;  %v635_v32 = vmax.f32 %v627_v28, 0.0 }
  0xf3   : > { %v634_v31 = vmax.f32 %v626_v25, 0.0  ;;  %v636_v33 = vmax.f32 %v628_v29, 0.0 }
  0xf4   : > { %641 = vst [vmem:[%s258_s28 + $0x20] sm:$0xff] %v633_v30 }
  0xf5   : > { %642 = vst [vmem:[%s258_s28 + $0x28] sm:$0xff] %v634_v31 }
  0xf6   : > { %643 = vst [vmem:[%s258_s28 + $0x30] sm:$0xff] %v635_v32 }
  0xf7   : > { %644 = vst [vmem:[%s258_s28 + $0x38] sm:$0xff] %v636_v33 }
  0xf8   : > { %996 = shalt.err (!%p993_p11)
}
  0xf9   : > { %806 = dma.vmem_to_hbm [thread:$0]  (%p1170_p13), %s660_s15, 1024, %s662_s10, %s646_s19  }
  0xfa PF: > { %p826_p12 = scmp.ge.s32.totalorder %s1055_s17, 2  ;;  %s673_s29 = sand.u32 1, %s1035_s12  }
  0xfb   : > { %s674_s11 = scalar_lea.sflag [#allocation5], %s673_s29 }
  0xfc   : > { %p820_p2 = pnand %p826_p12, %p1174_p0 }
  0xfe   : > { %p821_p3 = pneg %p820_p2 }
 0x100   : > { %1030 = dma.done.wait (%p821_p3), %s674_s11, 1024  }
 0x101   : > { %1032 = vsyncadd (%p821_p3), %s674_s11, 4294966272  ;;  %s20_s17 = sadd.s32 1, %s1055_s17   ;;  %s1393_s12 = smov %s1039_s13 }
 0x102   : > { %p17_p1 = scmp.ge.s32.totalorder %s20_s17, 22   ;;  %s1394_s13 = smov %s1043_s14 }
 0x103   : > { %s1395_s14 = smov %s1132_s25  ;;  %s1396_s15 = smov %s1051_s16 }
 0x104   : > { %s1397_s16 = smov %s1399_s18  ;;  %19 = sbr.rel (!%p17_p1) target bundleno = 7 (0x7), region = 102 }
 0x109   :  { %680 = vsyncpa [#allocation4], 1 }
 0x10a   :  { %682 = vsyncpa [#allocation4 + $0x1], 1 }
 0x10b   :  { %683 = vsyncpa [#allocation7], 1 }
 0x10c   :  { %685 = vsyncpa [#allocation7 + $0x1], 1 }
 0x10d   :  { %686 = vsyncpa [#allocation5], 1 }
 0x10e   :  { %688 = vsyncpa [#allocation5 + $0x1], 1 }

</bundles_post_ra>
